<compile_context>
chip_gen: v7x
topology: tpu7x:2x2x1
jax: 0.10.0
libtpu: 0.0.40
codegen_flags: <defaults>
</compile_context>

<pallas_src>
import jax
import jax.numpy as jnp
from jax.experimental import pallas as pl
from jax.experimental.pallas import tpu as pltpu

N_MEMBERS = 2           # n = len(task_weights_list) = num_members
NUM_TASKS = 2


# ---------------------------------------------------------------------------
# Fused Pallas kernel: conv(im2col matmul) + bias + ReLU + avg-pool + linear
# ---------------------------------------------------------------------------
def _fused_subspace_kernel(patches_ref, w_ref, b_ref, lw_ref, lb_ref,
                           o_ref, acc_ref):
    """Fused SubspaceConv2d -> ReLU -> global-avg-pool -> SubspaceLinear.

    patches_ref: VMEM (1, TM, K)    f32 im2col tile of one batch element
    w_ref:       VMEM (K, Cout)     f32 pre-combined conv weight (sum_i a_i W_i)
    b_ref:       VMEM (1, Cout)     f32 pre-combined conv bias
    lw_ref:      VMEM (Cout, Out)   f32 pre-combined linear weight, pre-scaled by 1/HW
    lb_ref:      VMEM (1, Out)      f32 pre-combined linear bias
    o_ref:       VMEM (1, 1, Out)   f32 output row for this batch element
    acc_ref:     VMEM (1, Cout)     f32 pooled-sum accumulator (scratch)
    grid = (batch, M_tiles); the M axis is the pooled reduction ("arbitrary").
    """
    mi = pl.program_id(1)

    @pl.when(mi == 0)
    def _init():
        acc_ref[...] = jnp.zeros_like(acc_ref)

    # Conv-as-matmul on this patch tile (f32 operands, f32 accumulate).
    p = patches_ref[0]                                            # (TM, K)
    y = jnp.dot(p, w_ref[...], preferred_element_type=jnp.float32)
    y = jnp.maximum(y + b_ref[...], 0.0)                          # bias + ReLU
    acc_ref[...] += jnp.sum(y, axis=0, keepdims=True)             # partial pooled sum

    # Finalize on the last M tile: fused SubspaceLinear (1/HW folded into lw).
    @pl.when(mi == pl.num_programs(1) - 1)
    def _finalize():
        out = jnp.dot(acc_ref[...], lw_ref[...],
                      preferred_element_type=jnp.float32) + lb_ref[...]
        o_ref[0] = out.astype(o_ref.dtype)


# ---------------------------------------------------------------------------
# Host-side glue (alpha combine, im2col, tiling) — plain JAX
# ---------------------------------------------------------------------------
def im2col_3x3_same(x):
    """x: NCHW -> (N, H*W, Cin*9); flatten order (Cin, kh, kw). Unpadded f32."""
    n, c, h, w = x.shape
    xp = jnp.pad(x, ((0, 0), (0, 0), (1, 1), (1, 1)))
    cols = [xp[:, :, dh:dh + h, dw:dw + w] for dh in range(3) for dw in range(3)]
    p = jnp.stack(cols, axis=2)                                   # (N, C, 9, H, W)
    p = p.transpose(0, 3, 4, 1, 2)                                # (N, H, W, C, 9)
    return p.reshape(n, h * w, c * 9)                             # (N, HW, K)


def _pick_tile_m(hw, cap=2048):
    """Whole HW if it fits the cap (always a legal full-dim block); otherwise the
    largest multiple-of-8 divisor of HW <= cap; otherwise whole HW (one tile)."""
    if hw <= cap:
        return hw
    for t in range(cap - cap % 8, 7, -8):
        if hw % t == 0:
            return t
    return hw


def weight_ensemble_forward(x, params, alpha):
    """Forward of BaseWeightEnsemble via one fused Pallas kernel."""
    n_batch, cin, h, w = x.shape
    hw = h * w
    n_mem, cout, _, kh, kw = params["conv_w"].shape
    k = cin * kh * kw
    out_dim = params["lin_w"].shape[1]

    # --- alpha weight-combine on the host (exact f32 multiply-add, n=2) ---
    conv_w_k = params["conv_w"].reshape(n_mem, cout, k)
    w_eff = jnp.sum(alpha[:, None, None] * conv_w_k, axis=0).T            # (K, Cout)
    b_eff = jnp.sum(alpha[:, None] * params["conv_b"], axis=0)[None, :]   # (1, Cout)
    lw_eff = jnp.sum(alpha[:, None, None] * params["lin_w"], axis=0).T / hw  # (Cout, Out), 1/HW folded
    lb_eff = jnp.sum(alpha[:, None] * params["lin_b"], axis=0)[None, :]   # (1, Out)

    # --- im2col patches, unpadded (K = Cin*9 as a full-array last dim) ---
    # TODO(synk): move the patch construction into the kernel (halo-tile im2col).
    patches = im2col_3x3_same(x)                                          # (N, HW, K) f32

    tile_m = _pick_tile_m(hw)
    m_tiles = hw // tile_m
    grid = (n_batch, m_tiles)

    out3 = pl.pallas_call(
        _fused_subspace_kernel,
        out_shape=jax.ShapeDtypeStruct((n_batch, 1, out_dim), jnp.float32),
        grid=grid,
        in_specs=[
            pl.BlockSpec((1, tile_m, k), lambda b, mi: (b, mi, 0)),       # patches tile
            pl.BlockSpec((k, cout), lambda b, mi: (0, 0)),                # W_eff (conv)
            pl.BlockSpec((1, cout), lambda b, mi: (0, 0)),                # b_eff (conv)
            pl.BlockSpec((cout, out_dim), lambda b, mi: (0, 0)),          # lin_W_eff
            pl.BlockSpec((1, out_dim), lambda b, mi: (0, 0)),             # lin_b_eff
        ],
        out_specs=pl.BlockSpec((1, 1, out_dim), lambda b, mi: (b, 0, 0)),
        scratch_shapes=[pltpu.VMEM((1, cout), jnp.float32)],              # pooled-sum acc
        compiler_params=pltpu.CompilerParams(
            dimension_semantics=("parallel", "arbitrary"),
        ),
    )(patches, w_eff, b_eff, lw_eff, lb_eff)

    return out3[:, 0, :]                                                  # (N, Out)


# ---------------------------------------------------------------------------
# Pure-JAX reference (for correctness check)
# ---------------------------------------------------------------------------
def reference_forward(x, params, alpha):
    w = jnp.sum(alpha[:, None, None, None, None] * params["conv_w"], axis=0)
    b = jnp.sum(alpha[:, None] * params["conv_b"], axis=0)
    y = jax.lax.conv_general_dilated(
        x, w, window_strides=(1, 1), padding="SAME",
        dimension_numbers=("NCHW", "OIHW", "NCHW"),
        precision=jax.lax.Precision.HIGHEST)
    y = jax.nn.relu(y + b[None, :, None, None])
    feat = jnp.mean(y, axis=(2, 3))                                # global avg pool
    lw = jnp.sum(alpha[:, None, None] * params["lin_w"], axis=0)   # (Out, Cout)
    lb = jnp.sum(alpha[:, None] * params["lin_b"], axis=0)
    return feat @ lw.T + lb


# ---------------------------------------------------------------------------
# main
# ---------------------------------------------------------------------------
if __name__ == "__main__":
    key = jax.random.PRNGKey(0)
    k_x, k_cw, k_cb, k_lw, k_lb = jax.random.split(key, 5)

    N, CIN, H, W = 2, 4, 16, 16
    COUT, OUT = 8, 10

    # deterministic synthetic parameters: n ensemble member copies per layer
    params = {
        "conv_w": 0.1 * jax.random.normal(k_cw, (N_MEMBERS, COUT, CIN, 3, 3), jnp.float32),
        "conv_b": 0.1 * jax.random.normal(k_cb, (N_MEMBERS, COUT), jnp.float32),
        "lin_w":  0.1 * jax.random.normal(k_lw, (N_MEMBERS, OUT, COUT), jnp.float32),
        "lin_b":  0.1 * jax.random.normal(k_lb, (N_MEMBERS, OUT), jnp.float32),
    }

    x = jax.random.normal(k_x, (N, CIN, H, W), jnp.float32)

    # task_weights_list buffer (as in __init__) and a fixed evaluation alpha
    task_weights_list = jnp.asarray([[1.0, 0.0], [0.0, 1.0]], jnp.float32)
    alpha = jnp.asarray([0.3, 0.7], jnp.float32)                   # set_alpha(alpha)
    task_weights = jnp.einsum("n,nt->t", alpha, task_weights_list) # loss weights (unused in fwd)

    out = weight_ensemble_forward(x, params, alpha)
    out = jax.block_until_ready(out)

    ref = reference_forward(x, params, alpha)
    assert out.shape == (N, OUT)
    # f32 end-to-end now; remaining gap is only TPU matmul pass precision.
    max_err = float(jnp.max(jnp.abs(out - ref)))
    assert jnp.allclose(out, ref, atol=2e-3, rtol=2e-3), f"max abs err {max_err}"

    print("KERNEL_OK")
</pallas_src>

<mosaic_0001>
module attributes {stable_mosaic.version = 11 : i64} {
  func.func @_fused_subspace_kernel(%arg0: i32, %arg1: i32, %arg2: memref<1x256x36xf32, #tpu.memory_space<vmem>>, %arg3: memref<36x8xf32, #tpu.memory_space<vmem>>, %arg4: memref<1x8xf32, #tpu.memory_space<vmem>>, %arg5: memref<8x10xf32, #tpu.memory_space<vmem>>, %arg6: memref<1x10xf32, #tpu.memory_space<vmem>>, %arg7: memref<1x1x10xf32, #tpu.memory_space<vmem>>, %arg8: memref<1x8xf32, #tpu.memory_space<vmem>>) attributes {dimension_semantics = [#tpu.dimension_semantics<parallel>, #tpu.dimension_semantics<arbitrary>], iteration_bounds = array<i64: 2, 1>, scalar_prefetch = 0 : i64, scratch_operands = 1 : i64, tpu.core_type = #tpu.core_type<tc>, window_params = [{transform_indices = @transform_0, window_bounds = array<i64: 1, 256, 36>}, {pipeline_mode = #tpu.pipeline_mode<synchronous>, transform_indices = @transform_1, window_bounds = array<i64: 36, 8>}, {pipeline_mode = #tpu.pipeline_mode<synchronous>, transform_indices = @transform_2, window_bounds = array<i64: 1, 8>}, {pipeline_mode = #tpu.pipeline_mode<synchronous>, transform_indices = @transform_3, window_bounds = array<i64: 8, 10>}, {pipeline_mode = #tpu.pipeline_mode<synchronous>, transform_indices = @transform_4, window_bounds = array<i64: 1, 10>}, {transform_indices = @transform_5, window_bounds = array<i64: 1, 1, 10>}]} {
    %c0_i32 = arith.constant 0 : i32
    %0 = arith.cmpi eq, %arg1, %c0_i32 : i32
    %1 = arith.extui %0 : i1 to i32
    %c0_i32_0 = arith.constant 0 : i32
    %2 = arith.cmpi ne, %1, %c0_i32_0 : i32
    scf.if %2 {
      %cst_15 = arith.constant 0.000000e+00 : f32
      %20 = vector.broadcast %cst_15 : f32 to vector<1x8xf32>
      %c0_16 = arith.constant 0 : index
      %c0_17 = arith.constant 0 : index
      %21 = vector.load %arg8[%c0_16, %c0_17] : memref<1x8xf32, #tpu.memory_space<vmem>>, vector<1x8xf32>
      tpu.vector_store %arg8[%c0_16, %c0_17], %20 {strides = array<i32>} : memref<1x8xf32, #tpu.memory_space<vmem>>, vector<1x8xf32>,
    } else {
    }
    %c0 = arith.constant 0 : index
    %c0_1 = arith.constant 0 : index
    %c0_2 = arith.constant 0 : index
    %3 = vector.load %arg2[%c0, %c0_1, %c0_2] : memref<1x256x36xf32, #tpu.memory_space<vmem>>, vector<1x256x36xf32>
    %4 = vector.shape_cast %3 : vector<1x256x36xf32> to vector<256x36xf32>
    %c0_3 = arith.constant 0 : index
    %c0_4 = arith.constant 0 : index
    %5 = vector.load %arg3[%c0_3, %c0_4] : memref<36x8xf32, #tpu.memory_space<vmem>>, vector<36x8xf32>
    %cst = arith.constant dense<0.000000e+00> : vector<256x8xf32>
    %6 = tpu.matmul %4, %5, %cst {dimension_numbers = #tpu.dot_dimension_numbers<[1], [0], [0], [1], [0, 0, 1, 1], [], []>} : vector<256x36xf32>, vector<36x8xf32>, vector<256x8xf32> -> vector<256x8xf32>
    %c0_5 = arith.constant 0 : index
    %c0_6 = arith.constant 0 : index
    %7 = vector.load %arg4[%c0_5, %c0_6] : memref<1x8xf32, #tpu.memory_space<vmem>>, vector<1x8xf32>
    %8 = vector.broadcast %7 : vector<1x8xf32> to vector<256x8xf32>
    %9 = arith.addf %6, %8 : vector<256x8xf32>
    %cst_7 = arith.constant 0.000000e+00 : f32
    %10 = vector.broadcast %cst_7 : f32 to vector<256x8xf32>
    %11 = arith.maximumf %9, %10 : vector<256x8xf32>
    %c0_8 = arith.constant 0 : index
    %c0_9 = arith.constant 0 : index
    %12 = vector.load %arg8[%c0_8, %c0_9] : memref<1x8xf32, #tpu.memory_space<vmem>>, vector<1x8xf32>
    %cst_10 = arith.constant dense<0.000000e+00> : vector<8xf32>
    %13 = vector.multi_reduction <add>, %11, %cst_10 [0] : vector<256x8xf32> to vector<8xf32>
    %14 = vector.shape_cast %13 : vector<8xf32> to vector<1x8xf32>
    %15 = arith.addf %12, %14 : vector<1x8xf32>
    %c0_11 = arith.constant 0 : index
    %c0_12 = arith.constant 0 : index
    %16 = vector.load %arg8[%c0_11, %c0_12] : memref<1x8xf32, #tpu.memory_space<vmem>>, vector<1x8xf32>
    tpu.vector_store %arg8[%c0_11, %c0_12], %15 {strides = array<i32>} : memref<1x8xf32, #tpu.memory_space<vmem>>, vector<1x8xf32>,
    %c0_i32_13 = arith.constant 0 : i32
    %17 = arith.cmpi eq, %arg1, %c0_i32_13 : i32
    %18 = arith.extui %17 : i1 to i32
    %c0_i32_14 = arith.constant 0 : i32
    %19 = arith.cmpi ne, %18, %c0_i32_14 : i32
    scf.if %19 {
      %c0_15 = arith.constant 0 : index
      %c0_16 = arith.constant 0 : index
      %20 = vector.load %arg8[%c0_15, %c0_16] : memref<1x8xf32, #tpu.memory_space<vmem>>, vector<1x8xf32>
      %c0_17 = arith.constant 0 : index
      %c0_18 = arith.constant 0 : index
      %21 = vector.load %arg5[%c0_17, %c0_18] : memref<8x10xf32, #tpu.memory_space<vmem>>, vector<8x10xf32>
      %cst_19 = arith.constant dense<0.000000e+00> : vector<1x10xf32>
      %22 = tpu.matmul %20, %21, %cst_19 {dimension_numbers = #tpu.dot_dimension_numbers<[1], [0], [0], [1], [0, 0, 1, 1], [], []>} : vector<1x8xf32>, vector<8x10xf32>, vector<1x10xf32> -> vector<1x10xf32>
      %c0_20 = arith.constant 0 : index
      %c0_21 = arith.constant 0 : index
      %23 = vector.load %arg6[%c0_20, %c0_21] : memref<1x10xf32, #tpu.memory_space<vmem>>, vector<1x10xf32>
      %24 = arith.addf %22, %23 : vector<1x10xf32>
      %c0_22 = arith.constant 0 : index
      %c0_23 = arith.constant 0 : index
      %c0_24 = arith.constant 0 : index
      %25 = vector.load %arg7[%c0_22, %c0_23, %c0_24] : memref<1x1x10xf32, #tpu.memory_space<vmem>>, vector<1x1x10xf32>
      %26 = vector.shape_cast %25 : vector<1x1x10xf32> to vector<1x10xf32>
      %27 = vector.shape_cast %24 : vector<1x10xf32> to vector<1x1x10xf32>
      tpu.vector_store %arg7[%c0_22, %c0_23, %c0_24], %27 {strides = array<i32>} : memref<1x1x10xf32, #tpu.memory_space<vmem>>, vector<1x1x10xf32>,
    } else {
    }
    return
  }
  func.func @transform_0(%arg0: i32, %arg1: i32) -> (i32, i32, i32) {
    %c0_i32 = arith.constant 0 : i32
    %c0_i32_0 = arith.constant 0 : i32
    return %arg0, %arg1, %c0_i32 : i32, i32, i32
  }
  func.func @transform_1(%arg0: i32, %arg1: i32) -> (i32, i32) {
    %c0_i32 = arith.constant 0 : i32
    %c0_i32_0 = arith.constant 0 : i32
    %c0_i32_1 = arith.constant 0 : i32
    return %c0_i32, %c0_i32_0 : i32, i32
  }
  func.func @transform_2(%arg0: i32, %arg1: i32) -> (i32, i32) {
    %c0_i32 = arith.constant 0 : i32
    %c0_i32_0 = arith.constant 0 : i32
    %c0_i32_1 = arith.constant 0 : i32
    return %c0_i32, %c0_i32_0 : i32, i32
  }
  func.func @transform_3(%arg0: i32, %arg1: i32) -> (i32, i32) {
    %c0_i32 = arith.constant 0 : i32
    %c0_i32_0 = arith.constant 0 : i32
    %c0_i32_1 = arith.constant 0 : i32
    return %c0_i32, %c0_i32_0 : i32, i32
  }
  func.func @transform_4(%arg0: i32, %arg1: i32) -> (i32, i32) {
    %c0_i32 = arith.constant 0 : i32
    %c0_i32_0 = arith.constant 0 : i32
    %c0_i32_1 = arith.constant 0 : i32
    return %c0_i32, %c0_i32_0 : i32, i32
  }
  func.func @transform_5(%arg0: i32, %arg1: i32) -> (i32, i32, i32) {
    %c0_i32 = arith.constant 0 : i32
    %c0_i32_0 = arith.constant 0 : i32
    %c0_i32_1 = arith.constant 0 : i32
    return %arg0, %c0_i32, %c0_i32_0 : i32, i32, i32
  }
}

</mosaic_0001>

<bundles_post_ra>
// kernel: tpu_custom_call.1
= control target key start
LH: loop header
LB: loop body
LE: loop exit
PB: predicated region body
PF: predicated region fallthrough
CT: control target
= control target key end

     0   :  { %10 = vsyncpa [#allocation4], 0  ;;  %s1540_s0 = inlined_call_operand.vmem [shape: f32[2,256,36], index: 0, kind: input, shape index: {}]   ;;  %s1541_s1 = inlined_call_operand.vmem [shape: f32[36,8], index: 1, kind: input, shape index: {}]   ;;  %s1542_s2 = inlined_call_operand.vmem [shape: f32[1,8], index: 2, kind: input, shape index: {}]   ;;  %s1543_s3 = inlined_call_operand.vmem [shape: f32[8,10], index: 3, kind: input, shape index: {}]   ;;  %s1544_s4 = inlined_call_operand.vmem [shape: f32[1,10], index: 4, kind: input, shape index: {}]   ;;  %s1545_s5 = inlined_call_operand.hbm [shape: f32[2,1,10], index: 5, kind: output, shape index: {}]  }
   0x1   :  { %12 = vsyncpa [#allocation4 + $0x1], 0  ;;  %s1227_s18 = smov 0   ;;  %s1229_s19 = smov 0  }
   0x2   :  { %s1231_s20 = smov 0   ;;  %s1233_s21 = smov 0  }
   0x3   :  { %s1235_s22 = smov 0   ;;  %s1237_s23 = smov 0  }
   0x4 LB: > { %s895_s24 = sadd.s32 4294967295, %s1192_s23   ;;  %s896_s25 = sadd.s32 4294967294, %s1192_s23   ;;  %s1192_s23 = sphi %s1237_s23, %s18_s23   ;;  %s1188_s22 = sphi %s1235_s22, %s1552_s22   ;;  %s1184_s21 = sphi %s1233_s21, %s1551_s21   ;;  %s1180_s20 = sphi %s1231_s20, %s1550_s20   ;;  %s1176_s19 = sphi %s1229_s19, %s1549_s19   ;;  %s1172_s18 = sphi %s1227_s18, %s1548_s18  }
   0x5   : > { %s30_s26 = sadd.s32 1, %s1188_s22  ;;  %s149_s27 = sadd.s32 1, %s1180_s20 }
   0x6   : > { %p32_p0 = scmp.ge.s32.totalorder %s30_s26, 2  ;;  %p159_p1 = scmp.ne.s32.totalorder %s1180_s20, %s1176_s19 }
   0x7   : > { %p160_p2 = scmp.eq.s32.totalorder %s895_s24, 1  ;;  %p165_p3 = scmp.ne.s32.totalorder %s1176_s19, %s1172_s18 }
   0x8   : > { %s1554_s26 = smov (%p32_p0, %s30_s26), 0  ;;  %p166_p5 = scmp.eq.s32.totalorder %s896_s25, 1 }
   0x9   : > { %p1267_p4 = por %p160_p2, %p159_p1  ;;  %s146_s29 = ssub.s32 %s1188_s22, %s1554_s26 }
   0xa   : > { %p899_p6 = scmp.ge.s32.totalorder %s1192_s23, 1  ;;  %p147_p7 = scmp.eq.s32.totalorder %s146_s29, 0 }
   0xb   : > { %p1274_p8 = por %p166_p5, %p165_p3  ;;  %p209_p9 = scmp.lt.s32.totalorder %s1192_s23, 3 }
   0xc   : > { %s1280_s6 = scalar_select %p147_p7, %s1180_s20, %s149_s27  }
   0xd   : > { %p210_p10 = pnand %p899_p6, %p209_p9 }
   0xe   : > { %v288_v0 = vld [vmem:[%s1541_s1] sm:$0xff] (!%p210_p10)  ;;  %v289_v1 = vld [vmem:[%s1541_s1 + $0x8] sm:$0xff] (!%p210_p10)  ;;  %v290_v2 = vld [vmem:[%s1541_s1 + $0x10] sm:$0xff] (!%p210_p10)  ;;  %p241_p11 = scmp.lt.s32.totalorder (!%p210_p10), %s1184_s21, 1  ;;  %vm300_vm0 = vcmask (!%p210_p10), 293888   ;;  %vm397_vm1 = vcmask (!%p210_p10), 1043456  }
   0xf   : > { %213 = sbr.rel (%p210_p10) target bundleno = 560 (0x230), region = 40  ;;  %v1043_v3 = vpack.c.bf16 (!%p210_p10), %v289_v1, %v288_v0  ;;  %v291_v4 = vld [vmem:[%s1541_s1 + $0x18] sm:$0xff] (!%p210_p10)  ;;  %v292_v6 = vld [vmem:[%s1541_s1 + $0x20] sm:$0xf] (!%p210_p10)  ;;  %vm254_vm2 = vcmask (!%p210_p10), 57344   ;;  %v1194_v39 = vmov (!%p210_p10), 0.0  }
  0x10   : > { %v1047_v5 = vpack.c.bf16 (!%p210_p10), %v291_v4, %v290_v2  ;;  %255 = vst.msk [vmem:[#allocation2] sm:$0x1] (!%p210_p10), %vm254_vm2, %v1194_v39  ;;  %v736_v40 = vld [vmem:[%s1543_s3] sm:$0xff] (!%p210_p10)  ;;  %vm1195_vm3 = vmmov (!%p210_p10), 0   ;;  %vm659_vm4 = vcmask (!%p210_p10), 64512   ;;  %s238_s11 = sand.u32 (!%p210_p10), 1, %s1176_s19  }
  0x11   : > { %1044 = vmatprep.subr.bf16.mxu0 (!%p210_p10), %v1043_v3  ;;  %1051 = vmatprep.subr.bf16.mxu1 (!%p210_p10), %v1043_v3  ;;  %v1375_v41 = vld [vmem:[%s1542_s2] ss:$0 sm:$0xff] (!%p210_p10)  ;;  %s937_s14 = sshll.u32 (!%p210_p10), %s1184_s21, 4  ;;  %vm811_vm5 = vcmask (!%p210_p10), 73728   ;;  %s814_s27 = scalar_lea.sflag (!%p210_p10), [#allocation4], %s238_s11 }
  0x12   : > { %1046 = vmatpush3.bf16.msra.mxu0 (!%p210_p10), %v1043_v3  ;;  %1054 = vmatpush3.bf16.msra.mxu1 (!%p210_p10), %v1043_v3 }
  0x13   : > { %1048 = vmatprep.subr.bf16.mxu0 (!%p210_p10), %v1047_v5  ;;  %1052 = vmatprep.subr.bf16.mxu1 (!%p210_p10), %v1047_v5 }
  0x16   : > { %s242_s15 = scalar_select %p241_p11, %s1184_s21, 1  ;;  %1050 = vmatpush3.bf16.msra.mxu0 %v1047_v5  ;;  %1055 = vmatpush3.bf16.msra.mxu1 %v1047_v5 }
  0x17   : > { %988 = vmatprep.subr.msk.mxu0 %vm397_vm1, %v292_v6  ;;  %1053 = vmatprep.subr.msk.mxu1 %vm397_vm1, %v292_v6  ;;  %s1196_s21 = smov [#allocation3]  }
  0x18   : > { %s940_s16 = sshll.u32 %s242_s15, 8  ;;  %s239_s15 = scalar_lea.vmem [#allocation3], %s238_s11 }
  0x19   : > { %s1299_s25 = scalar_lea.vmem %s1540_s0, %s940_s16  ;;  %s826_s16 = sshll.u32 %s239_s15, 4  ;;  %s1495_s16 = int_to_ptr.vmem [resolvable:$true] %s826_s16 }
  0x1a   : > { %v256_v7 = vld [vmem:[%s1299_s25] sm:$0xff]  ;;  %v257_v8 = vld [vmem:[%s1299_s25 + $0x8] sm:$0xff]  ;;  %v258_v9 = vld [vmem:[%s1299_s25 + $0x10] sm:$0xff]  ;;  %989 = vmatpush3.msk.msra.mxu0 %vm397_vm1, %v292_v6  ;;  %1056 = vmatpush3.msk.msra.mxu1 %vm397_vm1, %v292_v6  ;;  %s1114_s29 = scalar_lea.vmem %s1495_s16, 16  ;;  %s1118_s7 = sshll.u32 %s1196_s21, 4  ;;  %s1119_s7 = int_to_ptr.vmem [resolvable:$false] %s1118_s7 }
  0x1b   : > { %990 = vmatprep.mubr.msk.f32.mxu0 %vm300_vm0, %v256_v7  ;;  %v274_v10 = vld [vmem:[%s1299_s25 + $0x90] sm:$0xff]  ;;  %v275_v11 = vld [vmem:[%s1299_s25 + $0x98] sm:$0xff]  ;;  %v276_v12 = vld [vmem:[%s1299_s25 + $0xa0] sm:$0xff]  ;;  %1038 = vmatprep.subr.mxu1 %v1194_v39  ;;  %p1115_p12 = scmp.ne.s32.totalorder %s1495_s16, %s1114_s29  ;;  %s1120_s8 = scalar_lea.vmem %s1119_s7, 32 }
  0x1c   : > { %991 = vmatmul.mubr.msk.f32.vlgmr.msra.gmra.mrb[0].mxu0 %vm300_vm0, %v257_v8  ;;  %1017 = vmatprep.mubr.msk.f32.mxu1 %vm300_vm0, %v274_v10  ;;  %v259_v13 = vld [vmem:[%s1299_s25 + $0x18] sm:$0xff]  ;;  %v260_v14 = vld [vmem:[%s1299_s25 + $0x20] sm:$0xff]  ;;  %v277_v15 = vld [vmem:[%s1299_s25 + $0xa8] sm:$0xff]  ;;  %p1121_p1 = scmp.lt.s32.totalorder %s1495_s16, %s1119_s7  ;;  %p1122_p2 = scmp.lt.s32.totalorder %s1120_s8, %s1114_s29 }
  0x1d   : > { %993 = vmatprep.mubr.msk.f32.mxu0 %vm300_vm0, %v258_v9  ;;  %1018 = vmatmul.mubr.msk.f32.vlgmr.msra.gmra.mrb[0].mxu1 %vm300_vm0, %v275_v11  ;;  %v278_v16 = vld [vmem:[%s1299_s25 + $0xb0] sm:$0xff]  ;;  %v261_v17 = vld [vmem:[%s1299_s25 + $0x28] sm:$0xff]  ;;  %v279_v19 = vld [vmem:[%s1299_s25 + $0xb8] sm:$0xff]  ;;  %p1116_p13 = pnand %p1115_p12, %p1267_p4 }
  0x1e   : > { %1020 = vmatprep.mubr.msk.f32.mxu1 %vm300_vm0, %v276_v12  ;;  %v262_v18 = vld [vmem:[%s1299_s25 + $0x30] sm:$0xff]  ;;  %v280_v20 = vld [vmem:[%s1299_s25 + $0xc0] sm:$0xff]  ;;  %v263_v21 = vld [vmem:[%s1299_s25 + $0x38] sm:$0xff]  ;;  %1039 = vmatpush3.msra.mxu1 %v736_v40  ;;  %p1123_p3 = por %p1122_p2, %p1121_p1 }
  0x1f   : > { %v264_v22 = vld [vmem:[%s1299_s25 + $0x40] sm:$0xff]  ;;  %v281_v23 = vld [vmem:[%s1299_s25 + $0xc8] sm:$0xff]  ;;  %v282_v24 = vld [vmem:[%s1299_s25 + $0xd0] sm:$0xff]  ;;  %p1117_p0 = pneg %p1116_p13 }
  0x20   : > { %994 = vmatmul.mubr.msk.f32.gmra.mrb[2].mxu0 %vm300_vm0, %v259_v13  ;;  %v265_v25 = vld [vmem:[%s1299_s25 + $0x48] sm:$0xff]  ;;  %v266_v26 = vld [vmem:[%s1299_s25 + $0x50] sm:$0xff]  ;;  %v283_v27 = vld [vmem:[%s1299_s25 + $0xd8] sm:$0xff] }
  0x21   : > { %996 = vmatprep.mubr.msk.f32.mxu0 %vm300_vm0, %v260_v14  ;;  %1021 = vmatmul.mubr.msk.f32.gmra.mrb[2].mxu1 %vm300_vm0, %v277_v15  ;;  %v284_v28 = vld [vmem:[%s1299_s25 + $0xe0] sm:$0xff]  ;;  %v267_v29 = vld [vmem:[%s1299_s25 + $0x58] sm:$0xff]  ;;  %v285_v31 = vld [vmem:[%s1299_s25 + $0xe8] sm:$0xff]  ;;  %p1124_p5 = pnand %p1123_p3, %p1117_p0 }
  0x22   : > { %1023 = vmatprep.mubr.msk.f32.mxu1 %vm300_vm0, %v278_v16  ;;  %v268_v30 = vld [vmem:[%s1299_s25 + $0x60] sm:$0xff]  ;;  %v286_v32 = vld [vmem:[%s1299_s25 + $0xf0] sm:$0xff]  ;;  %v269_v33 = vld [vmem:[%s1299_s25 + $0x68] sm:$0xff] }
  0x23   : > { %v270_v34 = vld [vmem:[%s1299_s25 + $0x70] sm:$0xff]  ;;  %v287_v35 = vld [vmem:[%s1299_s25 + $0xf8] sm:$0xff]  ;;  %v272_v37 = vld [vmem:[%s1299_s25 + $0x80] sm:$0xff] }
  0x24   : > { %997 = vmatmul.mubr.msk.f32.gmra.mrb[4].mxu0 %vm300_vm0, %v261_v17  ;;  %v271_v36 = vld [vmem:[%s1299_s25 + $0x78] sm:$0xff]  ;;  %v273_v38 = vld [vmem:[%s1299_s25 + $0x88] sm:$0xff]  ;;  %s1493_s25 = scalar_lea.hbm %s1545_s5, %s937_s14 }
  0x25   : > { %999 = vmatprep.mubr.msk.f32.mxu0 %vm300_vm0, %v262_v18  ;;  %1024 = vmatmul.mubr.msk.f32.gmra.mrb[4].mxu1 %vm300_vm0, %v279_v19 }
  0x26   : > { %1026 = vmatprep.mubr.msk.f32.mxu1 %vm300_vm0, %v280_v20 }
  0x28   : > { %1000 = vmatmul.mubr.msk.f32.gmra.mrb[6].mxu0 %vm300_vm0, %v263_v21 }
  0x29   : > { %1002 = vmatprep.mubr.msk.f32.mxu0 %vm300_vm0, %v264_v22  ;;  %1027 = vmatmul.mubr.msk.f32.gmra.mrb[6].mxu1 %vm300_vm0, %v281_v23 }
  0x2a   : > { %1029 = vmatprep.mubr.msk.f32.mxu1 %vm300_vm0, %v282_v24 }
  0x2c   : > { %1003 = vmatmul.mubr.msk.f32.gmra.mrb[8].mxu0 %vm300_vm0, %v265_v25 }
  0x2d   : > { %1005 = vmatprep.mubr.msk.f32.mxu0 %vm300_vm0, %v266_v26  ;;  %1030 = vmatmul.mubr.msk.f32.gmra.mrb[8].mxu1 %vm300_vm0, %v283_v27 }
  0x2e   : > { %1032 = vmatprep.mubr.msk.f32.mxu1 %vm300_vm0, %v284_v28 }
  0x30   : > { %1006 = vmatmul.mubr.msk.f32.gmra.mrb[10].mxu0 %vm300_vm0, %v267_v29 }
  0x31   : > { %1008 = vmatprep.mubr.msk.f32.mxu0 %vm300_vm0, %v268_v30  ;;  %1033 = vmatmul.mubr.msk.f32.gmra.mrb[10].mxu1 %vm300_vm0, %v285_v31 }
  0x32   : > { %1035 = vmatprep.mubr.msk.f32.mxu1 %vm300_vm0, %v286_v32 }
  0x34   : > { %1009 = vmatmul.mubr.msk.f32.gmra.mrb[12].mxu0 %vm300_vm0, %v269_v33 }
  0x35   : > { %1011 = vmatprep.mubr.msk.f32.mxu0 %vm300_vm0, %v270_v34  ;;  %1036 = vmatmul.mubr.msk.f32.gmra.mrb[12].mxu1 %vm300_vm0, %v287_v35 }
  0x36   : > { %1040 = vmatprep.mubr.msk.f32.mxu1 %vm1195_vm3, %v1194_v39 }
  0x38   : > { %1012 = vmatmul.mubr.msk.f32.gmra.mrb[14].mxu0 %vm300_vm0, %v271_v36 }
  0x39   : > { %1014 = vmatprep.mubr.msk.f32.mxu0 %vm300_vm0, %v272_v37 }
  0x3c   : > { %1015 = vmatmul.mubr.msk.f32.gmra.mrb[16].mxu0 %vm300_vm0, %v273_v38 }
  0xef   : > { %v992_v42 = vpop.f32.mrb[0].mxu0 }
  0xf0   : > { %v473_v43 = vadd.f32 %v992_v42, %v1375_v41  ;;  %v467_v44 = vpop.f32.mrb[1].mxu0  ;;  %v1378_v45 = vpop.f32.mrb[0].mxu1 }
  0xf1   : > { %v468_v46 = vadd.f32 %v1375_v41, %v467_v44  ;;  %v1381_v47 = vpop.f32.mrb[1].mxu1 }
  0xf2   : > { %v627_v48 = vmax.f32 %v473_v43, 0.0 }
  0xf3   : > { %v626_v49 = vmax.f32 %v468_v46, 0.0  ;;  %v995_v50 = vpop.f32.mrb[2].mxu0 }
  0xf4   : > { %v661_v51 = vsel %vm659_vm4, %v627_v48, 0.0  ;;  %v483_v52 = vadd.f32 %v995_v50, %v1375_v41  ;;  %v477_v53 = vpop.f32.mrb[3].mxu0  ;;  %v1385_v54 = vpop.f32.mrb[2].mxu1 }
  0xf5   : > { %v660_v55 = vsel %vm659_vm4, %v626_v49, 0.0  ;;  %v478_v56 = vadd.f32 %v1375_v41, %v477_v53  ;;  %v1389_v57 = vpop.f32.mrb[3].mxu1 }
  0xf6   : > { %v662_v58 = vadd.f32 %v661_v51, %v660_v55  ;;  %v629_v59 = vmax.f32 %v483_v52, 0.0 }
  0xf7   : > { %v628_v60 = vmax.f32 %v478_v56, 0.0  ;;  %v998_v61 = vpop.f32.mrb[4].mxu0 }
  0xf8   : > { %v493_v62 = vadd.f32 %v998_v61, %v1375_v41  ;;  %v487_v63 = vpop.f32.mrb[5].mxu0  ;;  %v1392_v0 = vpop.f32.mrb[4].mxu1  ;;  %v665_v5 = vsel %vm659_vm4, %v629_v59, 0.0 }
  0xf9   : > { %v663_v1 = vsel %vm659_vm4, %v628_v60, 0.0  ;;  %v488_v2 = vadd.f32 %v1375_v41, %v487_v63  ;;  %v1396_v3 = vpop.f32.mrb[5].mxu1 }
  0xfa   : > { %v664_v4 = vadd.f32 %v663_v1, %v662_v58  ;;  %v631_v6 = vmax.f32 %v493_v62, 0.0 }
  0xfb   : > { %v630_v7 = vmax.f32 %v488_v2, 0.0  ;;  %v1001_v8 = vpop.f32.mrb[6].mxu0 }
  0xfc   : > { %v666_v9 = vadd.f32 %v665_v5, %v664_v4  ;;  %v503_v10 = vadd.f32 %v1001_v8, %v1375_v41  ;;  %v497_v11 = vpop.f32.mrb[7].mxu0  ;;  %v1400_v12 = vpop.f32.mrb[6].mxu1  ;;  %v669_v17 = vsel %vm659_vm4, %v631_v6, 0.0  ;;  %v558_v6 = vadd.f32 %v1375_v41, %v1381_v47 }
  0xfd   : > { %v667_v13 = vsel %vm659_vm4, %v630_v7, 0.0  ;;  %v498_v14 = vadd.f32 %v1375_v41, %v497_v11  ;;  %v1404_v15 = vpop.f32.mrb[7].mxu1 }
  0xfe   : > { %v668_v16 = vadd.f32 %v667_v13, %v666_v9  ;;  %v633_v18 = vmax.f32 %v503_v10, 0.0 }
  0xff   : > { %v632_v19 = vmax.f32 %v498_v14, 0.0  ;;  %v1004_v20 = vpop.f32.mrb[8].mxu0 }
 0x100   : > { %v670_v21 = vadd.f32 %v669_v17, %v668_v16  ;;  %v513_v22 = vadd.f32 %v1004_v20, %v1375_v41  ;;  %v507_v23 = vpop.f32.mrb[9].mxu0  ;;  %v1408_v24 = vpop.f32.mrb[8].mxu1  ;;  %v673_v29 = vsel %vm659_vm4, %v633_v18, 0.0  ;;  %v644_v20 = vmax.f32 %v558_v6, 0.0 }
 0x101   : > { %v671_v25 = vsel %vm659_vm4, %v632_v19, 0.0  ;;  %v508_v26 = vadd.f32 %v1375_v41, %v507_v23  ;;  %v1412_v27 = vpop.f32.mrb[9].mxu1  ;;  %v563_v19 = vadd.f32 %v1378_v45, %v1375_v41  ;;  %v568_v23 = vadd.f32 %v1375_v41, %v1389_v57 }
 0x102   : > { %v672_v28 = vadd.f32 %v671_v25, %v670_v21  ;;  %v635_v30 = vmax.f32 %v513_v22, 0.0  ;;  %v695_v45 = vsel %vm659_vm4, %v644_v20, 0.0 }
 0x103   : > { %v634_v31 = vmax.f32 %v508_v26, 0.0  ;;  %v1007_v32 = vpop.f32.mrb[10].mxu0 }
 0x104   : > { %v674_v33 = vadd.f32 %v673_v29, %v672_v28  ;;  %v523_v34 = vadd.f32 %v1007_v32, %v1375_v41  ;;  %v517_v35 = vpop.f32.mrb[11].mxu0  ;;  %v1416_v36 = vpop.f32.mrb[10].mxu1  ;;  %v677_v42 = vsel %vm659_vm4, %v635_v30, 0.0  ;;  %v645_v29 = vmax.f32 %v563_v19, 0.0 }
 0x105   : > { %v675_v37 = vsel %vm659_vm4, %v634_v31, 0.0  ;;  %v518_v38 = vadd.f32 %v1375_v41, %v517_v35  ;;  %v1420_v39 = vpop.f32.mrb[11].mxu1  ;;  %v573_v30 = vadd.f32 %v1385_v54, %v1375_v41  ;;  %v646_v32 = vmax.f32 %v568_v23, 0.0 }
 0x106   : > { %v676_v40 = vadd.f32 %v675_v37, %v674_v33  ;;  %v637_v43 = vmax.f32 %v523_v34, 0.0  ;;  %v578_v33 = vadd.f32 %v1375_v41, %v1396_v3  ;;  %v697_v35 = vsel %vm659_vm4, %v645_v29, 0.0 }
 0x107   : > { %v636_v44 = vmax.f32 %v518_v38, 0.0  ;;  %v1010_v46 = vpop.f32.mrb[12].mxu0  ;;  %v647_v37 = vmax.f32 %v573_v30, 0.0  ;;  %v699_v38 = vsel %vm659_vm4, %v646_v32, 0.0  ;;  %v588_v54 = vadd.f32 %v1375_v41, %v1404_v15 }
 0x108   : > { %v678_v48 = vadd.f32 %v677_v42, %v676_v40  ;;  %v533_v49 = vadd.f32 %v1010_v46, %v1375_v41  ;;  %v527_v50 = vpop.f32.mrb[13].mxu0  ;;  %v1424_v51 = vpop.f32.mrb[12].mxu1  ;;  %v681_v58 = vsel %vm659_vm4, %v637_v43, 0.0  ;;  %v583_v40 = vadd.f32 %v1392_v0, %v1375_v41 }
 0x109   : > { %v679_v52 = vsel %vm659_vm4, %v636_v44, 0.0  ;;  %v528_v53 = vadd.f32 %v1375_v41, %v527_v50  ;;  %v1428_v55 = vpop.f32.mrb[13].mxu1  ;;  %v648_v42 = vmax.f32 %v578_v33, 0.0  ;;  %v701_v44 = vsel %vm659_vm4, %v647_v37, 0.0 }
 0x10a   : > { %v680_v56 = vadd.f32 %v679_v52, %v678_v48  ;;  %v639_v59 = vmax.f32 %v533_v49, 0.0  ;;  %v593_v3 = vadd.f32 %v1400_v12, %v1375_v41  ;;  %v649_v48 = vmax.f32 %v583_v40, 0.0 }
 0x10b   : > { %v638_v60 = vmax.f32 %v528_v53, 0.0  ;;  %v1013_v61 = vpop.f32.mrb[14].mxu0  ;;  %v703_v49 = vsel %vm659_vm4, %v648_v42, 0.0  ;;  %v650_v50 = vmax.f32 %v588_v54, 0.0  ;;  %v598_v52 = vadd.f32 %v1375_v41, %v1412_v27 }
 0x10c   : > { %v682_v62 = vadd.f32 %v681_v58, %v680_v56  ;;  %v543_v63 = vadd.f32 %v1013_v61, %v1375_v41  ;;  %v537_v1 = vpop.f32.mrb[15].mxu0  ;;  %v685_v7 = vsel %vm659_vm4, %v639_v59, 0.0  ;;  %v651_v56 = vmax.f32 %v593_v3, 0.0 }
 0x10d   : > { %v683_v2 = vsel %vm659_vm4, %v638_v60, 0.0  ;;  %v538_v4 = vadd.f32 %v1375_v41, %v537_v1  ;;  %v603_v15 = vadd.f32 %v1408_v24, %v1375_v41  ;;  %v705_v58 = vsel %vm659_vm4, %v649_v48, 0.0 }
 0x10e   : > { %v684_v5 = vadd.f32 %v683_v2, %v682_v62  ;;  %v641_v8 = vmax.f32 %v543_v63, 0.0  ;;  %v707_v59 = vsel %vm659_vm4, %v650_v50, 0.0  ;;  %v652_v60 = vmax.f32 %v598_v52, 0.0 }
 0x10f   : > { %v640_v9 = vmax.f32 %v538_v4, 0.0  ;;  %v1016_v10 = vpop.f32.mrb[16].mxu0  ;;  %v608_v12 = vadd.f32 %v1375_v41, %v1420_v39  ;;  %v709_v62 = vsel %vm659_vm4, %v651_v56, 0.0  ;;  %v653_v1 = vmax.f32 %v603_v15, 0.0 }
 0x110   : > { %v686_v11 = vadd.f32 %v685_v7, %v684_v5  ;;  %v553_v13 = vadd.f32 %v1016_v10, %v1375_v41  ;;  %v547_v14 = vpop.f32.mrb[17].mxu0  ;;  %v689_v47 = vsel %vm659_vm4, %v641_v8, 0.0  ;;  %v711_v27 = vsel %vm659_vm4, %v652_v60, 0.0 }
 0x111   : > { %v687_v16 = vsel %vm659_vm4, %v640_v9, 0.0  ;;  %v548_v17 = vadd.f32 %v1375_v41, %v547_v14  ;;  %v613_v2 = vadd.f32 %v1416_v36, %v1375_v41  ;;  %v654_v4 = vmax.f32 %v608_v12, 0.0 }
 0x112   : > { %v688_v18 = vadd.f32 %v687_v16, %v686_v11  ;;  %v643_v21 = vmax.f32 %v553_v13, 0.0  ;;  %v618_v24 = vadd.f32 %v1375_v41, %v1428_v55  ;;  %v713_v6 = vsel %vm659_vm4, %v653_v1, 0.0 }
 0x113   : > { %v642_v22 = vmax.f32 %v548_v17, 0.0  ;;  %v655_v8 = vmax.f32 %v613_v2, 0.0  ;;  %v715_v39 = vsel %vm659_vm4, %v654_v4, 0.0  ;;  %v623_v9 = vadd.f32 %v1424_v51, %v1375_v41  ;;  %v658_v51 = vld [vmem:[#allocation2] sm:$0x1] }
 0x114   : > { %v690_v25 = vadd.f32 %v689_v47, %v688_v18  ;;  %v693_v31 = vsel %vm659_vm4, %v643_v21, 0.0  ;;  %v656_v10 = vmax.f32 %v618_v24, 0.0 }
 0x115   : > { %v691_v26 = vsel %vm659_vm4, %v642_v22, 0.0  ;;  %v717_v14 = vsel %vm659_vm4, %v655_v8, 0.0  ;;  %v657_v36 = vmax.f32 %v623_v9, 0.0 }
 0x116   : > { %v692_v28 = vadd.f32 %v691_v26, %v690_v25  ;;  %v719_v16 = vsel %vm659_vm4, %v656_v10, 0.0 }
 0x117   : > { %v721_v18 = vsel %vm659_vm4, %v657_v36, 0.0 }
 0x118   : > { %v694_v34 = vadd.f32 %v693_v31, %v692_v28  ;;  %v737_v28 = vld [vmem:[%s1544_s4] sm:$0x1] }
 0x11a   : > { %v696_v57 = vadd.f32 %v695_v45, %v694_v34 }
 0x11c   : > { %v698_v43 = vadd.f32 %v697_v35, %v696_v57 }
 0x11e   : > { %v700_v46 = vadd.f32 %v699_v38, %v698_v43 }
 0x120   : > { %v702_v53 = vadd.f32 %v701_v44, %v700_v46 }
 0x122   : > { %v704_v0 = vadd.f32 %v703_v49, %v702_v53 }
 0x124   : > { %v706_v61 = vadd.f32 %v705_v58, %v704_v0 }
 0x126   : > { %v708_v63 = vadd.f32 %v707_v59, %v706_v61 }
 0x128   : > { %v710_v5 = vadd.f32 %v709_v62, %v708_v63 }
 0x12a   : > { %v712_v7 = vadd.f32 %v711_v27, %v710_v5 }
 0x12c   : > { %v714_v11 = vadd.f32 %v713_v6, %v712_v7 }
 0x12e   : > { %v716_v13 = vadd.f32 %v715_v39, %v714_v11 }
 0x130   : > { %v718_v55 = vadd.f32 %v717_v14, %v716_v13 }
 0x132   : > { %v720_v17 = vadd.f32 %v719_v16, %v718_v55 }
 0x134   : > { %v722_v19 = vadd.f32 %v721_v18, %v720_v17 }
 0x136   : > { %v723_v20 = vrot.slane %v722_v19, 4 }
 0x138   : > { %v724_v47 = vadd.f32 %v723_v20, %v722_v19 }
 0x13a   : > { %v725_v21 = vrot.slane %v724_v47, 2 }
 0x13c   : > { %v726_v22 = vadd.f32 %v725_v21, %v724_v47 }
 0x13e   : > { %v727_v41 = vrot.slane %v726_v22, 1 }
 0x140   : > { %v728_v23 = vadd.f32 %v727_v41, %v726_v22 }
 0x142   : > { %v729_v25 = vadd.f32 %v728_v23, %v658_v51 }
 0x144   : > { %731 = vst.msk [vmem:[#allocation2] sm:$0x1] %vm254_vm2, %v729_v25 }
 0x14b   : > { %v735_v26 = vld [vmem:[#allocation2] sm:$0x1] }
 0x14c   : > { %1041 = vmatmul.mubr.msk.f32.vlgmr.msra.gmra.mrb[14].mxu1 %vm659_vm4, %v735_v26 }
 0x21f   : > { %v807_v29 = vpop.f32.mrb[14].mxu1 }
 0x220   : > { %v808_v30 = vadd.f32 %v807_v29, %v737_v28  ;;  %v1042_v31 = vpop.f32.mrb[15].mxu1 }
 0x222   : > { %812 = vst.msk [vmem:[%s239_s15] sm:$0x1] %vm811_vm5, %v808_v30 }
 0x223   : > { %1127 = shalt.err (!%p1124_p5)
}
 0x224   : > { %s1128_s9 = scalar_lea.hbm %s1493_s25, 16  ;;  %s1132_s12 = scalar_lea.hbm %s1545_s5, 32 }
 0x225   : > { %p1129_p6 = scmp.ne.s32.totalorder %s1493_s25, %s1128_s9  ;;  %p1133_p10 = scmp.lt.u32.totalorder %s1493_s25, %s1545_s5 }
 0x226   : > { %p1134_p11 = scmp.lt.u32.totalorder %s1132_s12, %s1128_s9  ;;  %p1136_p13 = scmp.lt.u32.totalorder %s1128_s9, %s1493_s25 }
 0x227   : > { %p1130_p7 = pnand %p1129_p6, %p1267_p4 }
 0x228   : > { %p1135_p12 = por %p1134_p11, %p1133_p10 }
 0x229   : > { %p1131_p9 = pneg %p1130_p7 }
 0x22a   : > { %p1137_p0 = por %p1136_p13, %p1135_p12 }
 0x22c   : > { %p1138_p1 = pnand %p1137_p0, %p1131_p9 }
 0x22e   : > { %1141 = shalt.err (!%p1138_p1)
}
 0x22f   : > { %1057 = dma.vmem_to_hbm [thread:$0]  (%p1267_p4), %s1495_s16, 16, %s1493_s25, %s814_s27  }
 0x230 PF: > { %p1063_p2 = scmp.ge.s32.totalorder %s1192_s23, 2  ;;  %s838_s15 = sand.u32 1, %s1172_s18  }
 0x231   : > { %s839_s17 = scalar_lea.sflag [#allocation4], %s838_s15 }
 0x232   : > { %p1060_p3 = pnand %p1063_p2, %p1274_p8 }
 0x234   : > { %1167 = dma.done.wait (!%p1060_p3), %s839_s17, 16  }
 0x235   : > { %1169 = vsyncadd (!%p1060_p3), %s839_s17, 4294967280  ;;  %s18_s23 = sadd.s32 1, %s1192_s23   ;;  %s1548_s18 = smov %s1176_s19 }
 0x236   : > { %p15_p5 = scmp.ge.s32.totalorder %s18_s23, 4   ;;  %s1549_s19 = smov %s1180_s20 }
 0x237   : > { %s1550_s20 = smov %s1280_s6  ;;  %s1551_s21 = smov %s1188_s22 }
 0x238   : > { %s1552_s22 = smov %s1554_s26  ;;  %17 = sbr.rel (!%p15_p5) target bundleno = 4 (0x4), region = 83 }
 0x23f   :  { %843 = vsyncpa [#allocation4], 1 }
 0x240   :  { %845 = vsyncpa [#allocation4 + $0x1], 1 }

</bundles_post_ra>
